<compile_context>
chip_gen: v6e
topology: v6e:2x2x1
jax: 0.10.0
libtpu: 0.0.40
codegen_flags: <defaults>
</compile_context>

<pallas_src>
import functools

import jax
import jax.numpy as jnp
import numpy as np
from jax.experimental import pallas as pl
from jax.experimental.pallas import tpu as pltpu


# --------------------------------------------------------------------------- #
# Generation-aware configuration helpers
# --------------------------------------------------------------------------- #
def _tpu_generation():
    try:
        kind = jax.devices()[0].device_kind.lower()
    except Exception:
        return 6
    for g in (7, 6, 5, 4, 3):
        if f"v{g}" in kind:
            return g
    return 6


def _vmem_limit_bytes(gen):
    """~20% headroom below physical VMEM (64 MiB/core on v7x, 128 MiB on v5e/v6e)."""
    try:
        cap = int(pltpu.get_tpu_info().vmem_capacity_bytes)
    except Exception:
        cap = (64 if gen >= 7 else 128) * 1024 * 1024
    return int(cap * 0.8)


def _const_spec(shape, index_map, single_buffer):
    """BlockSpec for grid-constant parameters.

    With single_buffer=True the param is single-buffered (pl.Buffered(1)): it is
    DMA'd once and never ping-ponged, halving its VMEM footprint."""
    if single_buffer:
        return pl.BlockSpec(shape, index_map, pipeline_mode=pl.Buffered(1))
    return pl.BlockSpec(shape, index_map)


def _pick_tile(n, target):
    """Largest tile <= target that divides n, preferring multiples of 8."""
    if n <= target:
        return n
    t = (target // 8) * 8
    while t >= 8:
        if n % t == 0:
            return t
        t -= 8
    for t in range(min(target, n), 0, -1):   # TODO(synk): ragged tails not padded
        if n % t == 0:
            return t
    return n


def _layer_norm(x, gamma, beta, eps):
    xf = x.astype(jnp.float32)
    mu = jnp.mean(xf, axis=-1, keepdims=True)
    xc = xf - mu
    var = jnp.mean(xc * xc, axis=-1, keepdims=True)
    inv = jax.lax.rsqrt(var + eps)
    return xc * inv * gamma.astype(jnp.float32) + beta.astype(jnp.float32)


# --------------------------------------------------------------------------- #
# Phase 1: LayerNorm + QKV projections (full-C MXU matmuls, computed once)
# --------------------------------------------------------------------------- #
def _q_proj_kernel(xq_ref, posq_ref, lnw_ref, lnb_ref, wq_ref, q_ref, *, eps):
    # q = LN_q(x_q + pos_q) @ Wq^T   (1/sqrt(head_dim) pre-folded into Wq)
    x = _layer_norm(xq_ref[0].astype(jnp.float32) + posq_ref[0].astype(jnp.float32),
                    lnw_ref[...], lnb_ref[...], eps)
    q_ref[0] = jax.lax.dot_general(
        x.astype(wq_ref.dtype), wq_ref[...], (((1,), (1,)), ((), ())),
        preferred_element_type=jnp.float32).astype(q_ref.dtype)


def _kv_proj_kernel(xkv_ref, posk_ref, lnw_ref, lnb_ref, wk_ref, wv_ref,
                    k_ref, v_ref, *, eps):
    # Shares the x_kv load between the K and V branches.
    xkv = xkv_ref[0].astype(jnp.float32)
    xk = _layer_norm(xkv + posk_ref[0].astype(jnp.float32),
                     lnw_ref[0:1, :], lnb_ref[0:1, :], eps)
    xv = _layer_norm(xkv, lnw_ref[1:2, :], lnb_ref[1:2, :], eps)
    cdt = wk_ref.dtype
    k_ref[0] = jax.lax.dot_general(
        xk.astype(cdt), wk_ref[...], (((1,), (1,)), ((), ())),
        preferred_element_type=jnp.float32).astype(k_ref.dtype)
    v_ref[0] = jax.lax.dot_general(
        xv.astype(cdt), wv_ref[...], (((1,), (1,)), ((), ())),
        preferred_element_type=jnp.float32).astype(v_ref.dtype)


# --------------------------------------------------------------------------- #
# Phase 2: flash attention (online softmax) + fused output projection
# --------------------------------------------------------------------------- #
def _flash_attn_kernel(q_ref, k_ref, v_ref, wp_ref, bp_ref, o_ref,
                       m_sc, l_sc, acc_sc, *, num_heads, head_dim, exp_dtype):
    ki = pl.program_id(2)
    H, D = num_heads, head_dim
    cdt = wp_ref.dtype

    @pl.when(ki == 0)
    def _init():
        m_sc[...] = jnp.full(m_sc.shape, -jnp.inf, m_sc.dtype)
        l_sc[...] = jnp.zeros(l_sc.shape, l_sc.dtype)
        acc_sc[...] = jnp.zeros(acc_sc.shape, acc_sc.dtype)

    q = q_ref[0]          # (tq, C) compute dtype, softmax scale pre-folded
    k = k_ref[0]          # (tk, C)
    v = v_ref[0]          # (tk, C)

    # Static head loop; heads are static lane slices of the (., C) tiles so the
    # MXU operands need no dynamic relayout and all scratch stays lane-dense.
    # TODO(synk): a fori_loop over heads would bound live ranges further but
    # requires dynamic-start lane slicing; kept static for robust lowering.
    for h in range(H):
        sl = slice(h * D, (h + 1) * D)
        s = jax.lax.dot_general(q[:, sl], k[:, sl], (((1,), (1,)), ((), ())),
                                preferred_element_type=jnp.float32)        # (tq, tk)
        m_prev = m_sc[:, h:h + 1]                                          # (tq, 1)
        m_new = jnp.maximum(m_prev, jnp.max(s, axis=-1, keepdims=True))
        alpha = jnp.exp((m_prev - m_new).astype(exp_dtype)).astype(jnp.float32)
        p = jnp.exp((s - m_new).astype(exp_dtype))                         # bf16 on v6e+
        l_sc[:, h:h + 1] = alpha * l_sc[:, h:h + 1] + jnp.sum(
            p.astype(jnp.float32), axis=-1, keepdims=True)
        pv = jax.lax.dot_general(p.astype(cdt), v[:, sl], (((1,), (0,)), ((), ())),
                                 preferred_element_type=jnp.float32)       # (tq, D)
        acc_sc[:, sl] = alpha * acc_sc[:, sl] + pv
        m_sc[:, h:h + 1] = m_new

    @pl.when(ki == pl.num_programs(2) - 1)
    def _finalize():
        inv_l = pl.reciprocal(l_sc[...], approx=True)                      # (tq, H) EUP
        ctx = jnp.concatenate(
            [acc_sc[:, h * D:(h + 1) * D] * inv_l[:, h:h + 1] for h in range(H)],
            axis=1).astype(cdt)                                            # (tq, C)
        out = jax.lax.dot_general(ctx, wp_ref[...], (((1,), (0,)), ((), ())),
                                  preferred_element_type=jnp.float32)      # (tq, Cout)
        o_ref[0] = (out + bp_ref[...].astype(jnp.float32)).astype(o_ref.dtype)


# --------------------------------------------------------------------------- #
# Parameter prep + forward wrapper
# --------------------------------------------------------------------------- #
def prepare_params(wq, wk, wv, wproj, bproj,
                   ln_w_q, ln_b_q, ln_w_k, ln_b_k, ln_w_v, ln_b_v,
                   *, num_heads, qk_scale=None, param_dtype=jnp.bfloat16):
    """One-time parameter prep: fold 1/sqrt(head_dim) into Wq, pre-transpose Wproj
    to (C, Cout), cast matmul weights to `param_dtype` (f32 MXU accumulation)."""
    C = wq.shape[1]
    D = C // num_heads
    scale = qk_scale if qk_scale is not None else float(D) ** -0.5
    return dict(
        w_q=(wq.astype(jnp.float32) * scale).astype(param_dtype),    # (C, C) (out,in)
        w_k=wk.astype(param_dtype),                                  # (C, C)
        w_v=wv.astype(param_dtype),                                  # (C, C)
        w_proj=wproj.T.astype(param_dtype),                          # (C, Cout)
        b_proj=bproj.reshape(1, -1).astype(jnp.float32),             # (1, Cout)
        ln_w_q=ln_w_q.reshape(1, C).astype(jnp.float32),
        ln_b_q=ln_b_q.reshape(1, C).astype(jnp.float32),
        ln_w_kv=jnp.stack([ln_w_k, ln_w_v], axis=0).astype(jnp.float32),   # (2, C)
        ln_b_kv=jnp.stack([ln_b_k, ln_b_v], axis=0).astype(jnp.float32),   # (2, C)
    )


def _forward_impl(x_q, x_kv, pos_q, pos_k, *, params, num_heads,
                  q_tile, kv_tile, eps, single_buffer_consts):
    B, Nq, C = x_q.shape
    _, Nk, _ = x_kv.shape
    H = num_heads
    D = C // H
    c_out = params["w_proj"].shape[-1]
    cdt = params["w_proj"].dtype
    gen = _tpu_generation()

    # Generation-aware tiles: 256 for the 2x256^2 MXU (v6e/v7x), 128 on v5e and older.
    tile_target = 256 if gen >= 6 else 128
    tq = _pick_tile(Nq, q_tile or tile_target)
    tk = _pick_tile(Nk, kv_tile or tile_target)

    # Do NOT materialize broadcast pos tensors; index batch 0 when pos has batch 1.
    if pos_q.ndim == 2:
        pos_q = pos_q[None]
    if pos_k.ndim == 2:
        pos_k = pos_k[None]
    posq_map = (lambda b, i: (0, i, 0)) if pos_q.shape[0] == 1 else (lambda b, i: (b, i, 0))
    posk_map = (lambda b, i: (0, i, 0)) if pos_k.shape[0] == 1 else (lambda b, i: (b, i, 0))

    vmem_limit = _vmem_limit_bytes(gen)
    cparams2d = pltpu.CompilerParams(
        dimension_semantics=("parallel", "parallel"), vmem_limit_bytes=vmem_limit)

    const = functools.partial(_const_spec, single_buffer=single_buffer_consts)

    # ---- Phase 1a: Q = LN_q(x_q + pos_q) @ Wq^T (scale folded) ----
    q = pl.pallas_call(
        functools.partial(_q_proj_kernel, eps=eps),
        out_shape=jax.ShapeDtypeStruct((B, Nq, C), cdt),
        grid=(B, Nq // tq),
        in_specs=[
            pl.BlockSpec((1, tq, C), lambda b, i: (b, i, 0)),        # x_q
            pl.BlockSpec((1, tq, C), posq_map),                      # pos_q (no bcast)
            const((1, C), lambda b, i: (0, 0)),                      # LN_q gamma
            const((1, C), lambda b, i: (0, 0)),                      # LN_q beta
            const((C, C), lambda b, i: (0, 0)),                      # Wq (scaled)
        ],
        out_specs=pl.BlockSpec((1, tq, C), lambda b, i: (b, i, 0)),
        compiler_params=cparams2d,
    )(x_q, pos_q, params["ln_w_q"], params["ln_b_q"], params["w_q"])

    # ---- Phase 1b: K = LN_k(x_kv + pos_k) @ Wk^T, V = LN_v(x_kv) @ Wv^T ----
    k, v = pl.pallas_call(
        functools.partial(_kv_proj_kernel, eps=eps),
        out_shape=(jax.ShapeDtypeStruct((B, Nk, C), cdt),
                   jax.ShapeDtypeStruct((B, Nk, C), cdt)),
        grid=(B, Nk // tk),
        in_specs=[
            pl.BlockSpec((1, tk, C), lambda b, i: (b, i, 0)),        # x_kv
            pl.BlockSpec((1, tk, C), posk_map),                      # pos_k (no bcast)
            const((2, C), lambda b, i: (0, 0)),                      # LN_k/LN_v gamma
            const((2, C), lambda b, i: (0, 0)),                      # LN_k/LN_v beta
            const((C, C), lambda b, i: (0, 0)),                      # Wk
            const((C, C), lambda b, i: (0, 0)),                      # Wv
        ],
        out_specs=(pl.BlockSpec((1, tk, C), lambda b, i: (b, i, 0)),
                   pl.BlockSpec((1, tk, C), lambda b, i: (b, i, 0))),
        compiler_params=cparams2d,
    )(x_kv, pos_k, params["ln_w_kv"], params["ln_b_kv"], params["w_k"], params["w_v"])

    # bf16 exponentials on v6e/v7x (bf16 EUP); keep f32 exp on v5e and older.
    exp_dtype = jnp.bfloat16 if (gen >= 6 and cdt == jnp.bfloat16) else jnp.float32

    # ---- Phase 2: flash attention + fused output projection ----
    out = pl.pallas_call(
        functools.partial(_flash_attn_kernel, num_heads=H, head_dim=D,
                          exp_dtype=exp_dtype),
        out_shape=jax.ShapeDtypeStruct((B, Nq, c_out), x_q.dtype),
        grid=(B, Nq // tq, Nk // tk),
        in_specs=[
            pl.BlockSpec((1, tq, C), lambda b, qi, ki: (b, qi, 0)),  # Q
            pl.BlockSpec((1, tk, C), lambda b, qi, ki: (b, ki, 0)),  # K
            pl.BlockSpec((1, tk, C), lambda b, qi, ki: (b, ki, 0)),  # V
            const((C, c_out), lambda b, qi, ki: (0, 0)),             # Wproj (C, Cout)
            const((1, c_out), lambda b, qi, ki: (0, 0)),             # bproj
        ],
        out_specs=pl.BlockSpec((1, tq, c_out), lambda b, qi, ki: (b, qi, 0)),
        scratch_shapes=[
            pltpu.VMEM((tq, H), jnp.float32),   # running max m (heads on lanes)
            pltpu.VMEM((tq, H), jnp.float32),   # running sum l
            pltpu.VMEM((tq, C), jnp.float32),   # context acc, head-concat layout
        ],
        compiler_params=pltpu.CompilerParams(
            dimension_semantics=("parallel", "parallel", "arbitrary"),
            vmem_limit_bytes=vmem_limit),
    )(q, k, v, params["w_proj"], params["b_proj"])
    return out


def attentive_block_forward(x_q, x_kv, pos_q, pos_k,
                            bool_masked_pos=None, rel_pos_bias=None,
                            *, params, num_heads, q_tile=None, kv_tile=None,
                            eps=1e-5):
    """Pallas forward of AttentiveBlock (bool_masked_pos / rel_pos_bias unused,
    matching the PyTorch reference forward)."""
    del bool_masked_pos, rel_pos_bias
    kwargs = dict(params=params, num_heads=num_heads, q_tile=q_tile,
                  kv_tile=kv_tile, eps=eps)
    try:
        return _forward_impl(x_q, x_kv, pos_q, pos_k,
                             single_buffer_consts=True, **kwargs)
    except Exception:
        # Fallback for jax versions without BlockSpec(pipeline_mode=pl.Buffered(1)).
        return _forward_impl(x_q, x_kv, pos_q, pos_k,
                             single_buffer_consts=False, **kwargs)


# --------------------------------------------------------------------------- #
# Pure-JAX reference + smoke test
# --------------------------------------------------------------------------- #
def _reference(x_q, x_kv, pos_q, pos_k, raw, *, num_heads, eps=1e-5, qk_scale=None):
    wq, wk, wv, wproj, bproj, gq, bq_, gk, bk_, gv, bv_ = raw

    def ln(x, g, b):
        mu = x.mean(-1, keepdims=True)
        var = ((x - mu) ** 2).mean(-1, keepdims=True)
        return (x - mu) / jnp.sqrt(var + eps) * g + b

    xq = ln(x_q + pos_q, gq, bq_)
    xk = ln(x_kv + pos_k, gk, bk_)
    xv = ln(x_kv, gv, bv_)
    B, Nq, C = xq.shape
    Nk = xk.shape[1]
    D = C // num_heads
    scale = qk_scale if qk_scale is not None else D ** -0.5
    q = jnp.einsum("bnc,oc->bno", xq, wq).reshape(B, Nq, num_heads, D).transpose(0, 2, 1, 3)
    k = jnp.einsum("bnc,oc->bno", xk, wk).reshape(B, Nk, num_heads, D).transpose(0, 2, 1, 3)
    v = jnp.einsum("bnc,oc->bno", xv, wv).reshape(B, Nk, num_heads, D).transpose(0, 2, 1, 3)
    attn = jax.nn.softmax(jnp.einsum("bhnd,bhmd->bhnm", q * scale, k), axis=-1)
    out = jnp.einsum("bhnm,bhmd->bhnd", attn, v).transpose(0, 2, 1, 3).reshape(B, Nq, C)
    return jnp.einsum("bnc,oc->bno", out, wproj) + bproj


if __name__ == "__main__":
    B, Nq, Nk, C, H = 2, 8, 16, 32, 4   # head_dim = 8

    key = jax.random.PRNGKey(0)
    ks = jax.random.split(key, 15)
    x_q = jax.random.normal(ks[0], (B, Nq, C), jnp.float32)
    x_kv = jax.random.normal(ks[1], (B, Nk, C), jnp.float32)
    pos_q = 0.1 * jax.random.normal(ks[2], (1, Nq, C), jnp.float32)   # broadcast over B
    pos_k = 0.1 * jax.random.normal(ks[3], (1, Nk, C), jnp.float32)
    wq = 0.05 * jax.random.normal(ks[4], (C, C), jnp.float32)
    wk = 0.05 * jax.random.normal(ks[5], (C, C), jnp.float32)
    wv = 0.05 * jax.random.normal(ks[6], (C, C), jnp.float32)
    wproj = 0.05 * jax.random.normal(ks[7], (C, C), jnp.float32)
    bproj = 0.05 * jax.random.normal(ks[8], (C,), jnp.float32)
    gq = 1.0 + 0.1 * jax.random.normal(ks[9], (C,), jnp.float32)
    bq_ = 0.1 * jax.random.normal(ks[10], (C,), jnp.float32)
    gk = 1.0 + 0.1 * jax.random.normal(ks[11], (C,), jnp.float32)
    bk_ = 0.1 * jax.random.normal(ks[12], (C,), jnp.float32)
    gv = 1.0 + 0.1 * jax.random.normal(ks[13], (C,), jnp.float32)
    bv_ = 0.1 * jax.random.normal(ks[14], (C,), jnp.float32)

    params = prepare_params(wq, wk, wv, wproj, bproj,
                            gq, bq_, gk, bk_, gv, bv_,
                            num_heads=H, param_dtype=jnp.bfloat16)
    out = attentive_block_forward(x_q, x_kv, pos_q, pos_k,
                                  params=params, num_heads=H)
    out = jax.block_until_ready(out)

    ref = _reference(x_q, x_kv, pos_q, pos_k,
                     (wq, wk, wv, wproj, bproj, gq, bq_, gk, bk_, gv, bv_),
                     num_heads=H)
    # bf16 params / bf16 MXU operands with f32 accumulation -> loose-ish tolerance.
    np.testing.assert_allclose(np.asarray(out, dtype=np.float32),
                               np.asarray(ref, dtype=np.float32),
                               rtol=2e-2, atol=2e-2)
    print("KERNEL_OK")
</pallas_src>

<mosaic_0001>
module attributes {stable_mosaic.version = 11 : i64} {
  func.func @_q_proj_kernel(%arg0: i32, %arg1: i32, %arg2: memref<1x8x32xf32, #tpu.memory_space<vmem>>, %arg3: memref<1x8x32xf32, #tpu.memory_space<vmem>>, %arg4: memref<1x32xf32, #tpu.memory_space<vmem>>, %arg5: memref<1x32xf32, #tpu.memory_space<vmem>>, %arg6: memref<32x32xbf16, #tpu.memory_space<vmem>>, %arg7: memref<1x8x32xbf16, #tpu.memory_space<vmem>>) attributes {dimension_semantics = [#tpu.dimension_semantics<parallel>, #tpu.dimension_semantics<parallel>], iteration_bounds = array<i64: 2, 1>, scalar_prefetch = 0 : i64, scratch_operands = 0 : i64, tpu.core_type = #tpu.core_type<tc>, window_params = [{transform_indices = @transform_0, window_bounds = array<i64: 1, 8, 32>}, {transform_indices = @transform_1, window_bounds = array<i64: 1, 8, 32>}, {pipeline_mode = #tpu.pipeline_mode<synchronous>, transform_indices = @transform_2, window_bounds = array<i64: 1, 32>}, {pipeline_mode = #tpu.pipeline_mode<synchronous>, transform_indices = @transform_3, window_bounds = array<i64: 1, 32>}, {pipeline_mode = #tpu.pipeline_mode<synchronous>, transform_indices = @transform_4, window_bounds = array<i64: 32, 32>}, {transform_indices = @transform_5, window_bounds = array<i64: 1, 8, 32>}]} {
    %c0 = arith.constant 0 : index
    %c0_0 = arith.constant 0 : index
    %c0_1 = arith.constant 0 : index
    %0 = vector.load %arg2[%c0, %c0_0, %c0_1] : memref<1x8x32xf32, #tpu.memory_space<vmem>>, vector<1x8x32xf32>
    %1 = vector.shape_cast %0 : vector<1x8x32xf32> to vector<8x32xf32>
    %c0_2 = arith.constant 0 : index
    %c0_3 = arith.constant 0 : index
    %c0_4 = arith.constant 0 : index
    %2 = vector.load %arg3[%c0_2, %c0_3, %c0_4] : memref<1x8x32xf32, #tpu.memory_space<vmem>>, vector<1x8x32xf32>
    %3 = vector.shape_cast %2 : vector<1x8x32xf32> to vector<8x32xf32>
    %4 = arith.addf %1, %3 : vector<8x32xf32>
    %c0_5 = arith.constant 0 : index
    %c0_6 = arith.constant 0 : index
    %5 = vector.load %arg4[%c0_5, %c0_6] : memref<1x32xf32, #tpu.memory_space<vmem>>, vector<1x32xf32>
    %c0_7 = arith.constant 0 : index
    %c0_8 = arith.constant 0 : index
    %6 = vector.load %arg5[%c0_7, %c0_8] : memref<1x32xf32, #tpu.memory_space<vmem>>, vector<1x32xf32>
    %cst = arith.constant dense<0.000000e+00> : vector<8xf32>
    %7 = vector.multi_reduction <add>, %4, %cst [1] : vector<8x32xf32> to vector<8xf32>
    %8 = vector.shape_cast %7 : vector<8xf32> to vector<8x1xf32>
    %cst_9 = arith.constant 3.200000e+01 : f32
    %9 = vector.broadcast %cst_9 : f32 to vector<8x1xf32>
    %10 = arith.divf %8, %9 : vector<8x1xf32>
    %11 = vector.broadcast %10 : vector<8x1xf32> to vector<8x32xf32>
    %12 = arith.subf %4, %11 : vector<8x32xf32>
    %13 = arith.mulf %12, %12 : vector<8x32xf32>
    %cst_10 = arith.constant dense<0.000000e+00> : vector<8xf32>
    %14 = vector.multi_reduction <add>, %13, %cst_10 [1] : vector<8x32xf32> to vector<8xf32>
    %15 = vector.shape_cast %14 : vector<8xf32> to vector<8x1xf32>
    %cst_11 = arith.constant 3.200000e+01 : f32
    %16 = vector.broadcast %cst_11 : f32 to vector<8x1xf32>
    %17 = arith.divf %15, %16 : vector<8x1xf32>
    %cst_12 = arith.constant 9.99999974E-6 : f32
    %18 = vector.broadcast %cst_12 : f32 to vector<8x1xf32>
    %19 = arith.addf %17, %18 : vector<8x1xf32>
    %20 = math.rsqrt %19 : vector<8x1xf32>
    %21 = vector.broadcast %20 : vector<8x1xf32> to vector<8x32xf32>
    %22 = arith.mulf %12, %21 : vector<8x32xf32>
    %23 = vector.broadcast %5 : vector<1x32xf32> to vector<8x32xf32>
    %24 = arith.mulf %22, %23 : vector<8x32xf32>
    %25 = vector.broadcast %6 : vector<1x32xf32> to vector<8x32xf32>
    %26 = arith.addf %24, %25 : vector<8x32xf32>
    %27 = arith.truncf %26 : vector<8x32xf32> to vector<8x32xbf16>
    %c0_13 = arith.constant 0 : index
    %c0_14 = arith.constant 0 : index
    %28 = vector.load %arg6[%c0_13, %c0_14] : memref<32x32xbf16, #tpu.memory_space<vmem>>, vector<32x32xbf16>
    %cst_15 = arith.constant dense<0.000000e+00> : vector<8x32xf32>
    %29 = tpu.matmul %27, %28, %cst_15 {dimension_numbers = #tpu.dot_dimension_numbers<[1], [1], [0], [0], [0, 0, 1, 0], [], []>} : vector<8x32xbf16>, vector<32x32xbf16>, vector<8x32xf32> -> vector<8x32xf32>
    %30 = arith.truncf %29 : vector<8x32xf32> to vector<8x32xbf16>
    %c0_16 = arith.constant 0 : index
    %c0_17 = arith.constant 0 : index
    %c0_18 = arith.constant 0 : index
    %31 = vector.load %arg7[%c0_16, %c0_17, %c0_18] : memref<1x8x32xbf16, #tpu.memory_space<vmem>>, vector<1x8x32xbf16>
    %32 = vector.shape_cast %31 : vector<1x8x32xbf16> to vector<8x32xbf16>
    %33 = vector.shape_cast %30 : vector<8x32xbf16> to vector<1x8x32xbf16>
    tpu.vector_store %arg7[%c0_16, %c0_17, %c0_18], %33 {strides = array<i32>} : memref<1x8x32xbf16, #tpu.memory_space<vmem>>, vector<1x8x32xbf16>,
    return
  }
  func.func @transform_0(%arg0: i32, %arg1: i32) -> (i32, i32, i32) {
    %c0_i32 = arith.constant 0 : i32
    %c0_i32_0 = arith.constant 0 : i32
    return %arg0, %arg1, %c0_i32 : i32, i32, i32
  }
  func.func @transform_1(%arg0: i32, %arg1: i32) -> (i32, i32, i32) {
    %c0_i32 = arith.constant 0 : i32
    %c0_i32_0 = arith.constant 0 : i32
    %c0_i32_1 = arith.constant 0 : i32
    return %c0_i32, %arg1, %c0_i32_0 : i32, i32, i32
  }
  func.func @transform_2(%arg0: i32, %arg1: i32) -> (i32, i32) {
    %c0_i32 = arith.constant 0 : i32
    %c0_i32_0 = arith.constant 0 : i32
    %c0_i32_1 = arith.constant 0 : i32
    return %c0_i32, %c0_i32_0 : i32, i32
  }
  func.func @transform_3(%arg0: i32, %arg1: i32) -> (i32, i32) {
    %c0_i32 = arith.constant 0 : i32
    %c0_i32_0 = arith.constant 0 : i32
    %c0_i32_1 = arith.constant 0 : i32
    return %c0_i32, %c0_i32_0 : i32, i32
  }
  func.func @transform_4(%arg0: i32, %arg1: i32) -> (i32, i32) {
    %c0_i32 = arith.constant 0 : i32
    %c0_i32_0 = arith.constant 0 : i32
    %c0_i32_1 = arith.constant 0 : i32
    return %c0_i32, %c0_i32_0 : i32, i32
  }
  func.func @transform_5(%arg0: i32, %arg1: i32) -> (i32, i32, i32) {
    %c0_i32 = arith.constant 0 : i32
    %c0_i32_0 = arith.constant 0 : i32
    return %arg0, %arg1, %c0_i32 : i32, i32, i32
  }
}

module attributes {stable_mosaic.version = 11 : i64} {
  func.func @_q_proj_kernel(%arg0: i32, %arg1: i32, %arg2: memref<1x8x32xf32, #tpu.memory_space<vmem>>, %arg3: memref<1x8x32xf32, #tpu.memory_space<vmem>>, %arg4: memref<1x32xf32, #tpu.memory_space<vmem>>, %arg5: memref<1x32xf32, #tpu.memory_space<vmem>>, %arg6: memref<32x32xbf16, #tpu.memory_space<vmem>>, %arg7: memref<1x8x32xbf16, #tpu.memory_space<vmem>>) attributes {dimension_semantics = [#tpu.dimension_semantics<parallel>, #tpu.dimension_semantics<parallel>], iteration_bounds = array<i64: 2, 1>, scalar_prefetch = 0 : i64, scratch_operands = 0 : i64, tpu.core_type = #tpu.core_type<tc>, window_params = [{transform_indices = @transform_0, window_bounds = array<i64: 1, 8, 32>}, {transform_indices = @transform_1, window_bounds = array<i64: 1, 8, 32>}, {pipeline_mode = #tpu.pipeline_mode<synchronous>, transform_indices = @transform_2, window_bounds = array<i64: 1, 32>}, {pipeline_mode = #tpu.pipeline_mode<synchronous>, transform_indices = @transform_3, window_bounds = array<i64: 1, 32>}, {pipeline_mode = #tpu.pipeline_mode<synchronous>, transform_indices = @transform_4, window_bounds = array<i64: 32, 32>}, {transform_indices = @transform_5, window_bounds = array<i64: 1, 8, 32>}]} {
    %c0 = arith.constant 0 : index
    %c0_0 = arith.constant 0 : index
    %c0_1 = arith.constant 0 : index
    %0 = vector.load %arg2[%c0, %c0_0, %c0_1] : memref<1x8x32xf32, #tpu.memory_space<vmem>>, vector<1x8x32xf32>
    %1 = vector.shape_cast %0 : vector<1x8x32xf32> to vector<8x32xf32>
    %c0_2 = arith.constant 0 : index
    %c0_3 = arith.constant 0 : index
    %c0_4 = arith.constant 0 : index
    %2 = vector.load %arg3[%c0_2, %c0_3, %c0_4] : memref<1x8x32xf32, #tpu.memory_space<vmem>>, vector<1x8x32xf32>
    %3 = vector.shape_cast %2 : vector<1x8x32xf32> to vector<8x32xf32>
    %4 = arith.addf %1, %3 : vector<8x32xf32>
    %c0_5 = arith.constant 0 : index
    %c0_6 = arith.constant 0 : index
    %5 = vector.load %arg4[%c0_5, %c0_6] : memref<1x32xf32, #tpu.memory_space<vmem>>, vector<1x32xf32>
    %c0_7 = arith.constant 0 : index
    %c0_8 = arith.constant 0 : index
    %6 = vector.load %arg5[%c0_7, %c0_8] : memref<1x32xf32, #tpu.memory_space<vmem>>, vector<1x32xf32>
    %cst = arith.constant dense<0.000000e+00> : vector<8xf32>
    %7 = vector.multi_reduction <add>, %4, %cst [1] : vector<8x32xf32> to vector<8xf32>
    %8 = vector.shape_cast %7 : vector<8xf32> to vector<8x1xf32>
    %cst_9 = arith.constant 3.200000e+01 : f32
    %9 = vector.broadcast %cst_9 : f32 to vector<8x1xf32>
    %10 = arith.divf %8, %9 : vector<8x1xf32>
    %11 = vector.broadcast %10 : vector<8x1xf32> to vector<8x32xf32>
    %12 = arith.subf %4, %11 : vector<8x32xf32>
    %13 = arith.mulf %12, %12 : vector<8x32xf32>
    %cst_10 = arith.constant dense<0.000000e+00> : vector<8xf32>
    %14 = vector.multi_reduction <add>, %13, %cst_10 [1] : vector<8x32xf32> to vector<8xf32>
    %15 = vector.shape_cast %14 : vector<8xf32> to vector<8x1xf32>
    %cst_11 = arith.constant 3.200000e+01 : f32
    %16 = vector.broadcast %cst_11 : f32 to vector<8x1xf32>
    %17 = arith.divf %15, %16 : vector<8x1xf32>
    %cst_12 = arith.constant 9.99999974E-6 : f32
    %18 = vector.broadcast %cst_12 : f32 to vector<8x1xf32>
    %19 = arith.addf %17, %18 : vector<8x1xf32>
    %20 = math.rsqrt %19 : vector<8x1xf32>
    %21 = vector.broadcast %20 : vector<8x1xf32> to vector<8x32xf32>
    %22 = arith.mulf %12, %21 : vector<8x32xf32>
    %23 = vector.broadcast %5 : vector<1x32xf32> to vector<8x32xf32>
    %24 = arith.mulf %22, %23 : vector<8x32xf32>
    %25 = vector.broadcast %6 : vector<1x32xf32> to vector<8x32xf32>
    %26 = arith.addf %24, %25 : vector<8x32xf32>
    %27 = arith.truncf %26 : vector<8x32xf32> to vector<8x32xbf16>
    %c0_13 = arith.constant 0 : index
    %c0_14 = arith.constant 0 : index
    %28 = vector.load %arg6[%c0_13, %c0_14] : memref<32x32xbf16, #tpu.memory_space<vmem>>, vector<32x32xbf16>
    %cst_15 = arith.constant dense<0.000000e+00> : vector<8x32xf32>
    %29 = tpu.matmul %27, %28, %cst_15 {dimension_numbers = #tpu.dot_dimension_numbers<[1], [1], [0], [0], [0, 0, 1, 0], [], []>} : vector<8x32xbf16>, vector<32x32xbf16>, vector<8x32xf32> -> vector<8x32xf32>
    %30 = arith.truncf %29 : vector<8x32xf32> to vector<8x32xbf16>
    %c0_16 = arith.constant 0 : index
    %c0_17 = arith.constant 0 : index
    %c0_18 = arith.constant 0 : index
    %31 = vector.load %arg7[%c0_16, %c0_17, %c0_18] : memref<1x8x32xbf16, #tpu.memory_space<vmem>>, vector<1x8x32xbf16>
    %32 = vector.shape_cast %31 : vector<1x8x32xbf16> to vector<8x32xbf16>
    %33 = vector.shape_cast %30 : vector<8x32xbf16> to vector<1x8x32xbf16>
    tpu.vector_store %arg7[%c0_16, %c0_17, %c0_18], %33 {strides = array<i32>} : memref<1x8x32xbf16, #tpu.memory_space<vmem>>, vector<1x8x32xbf16>,
    return
  }
  func.func @transform_0(%arg0: i32, %arg1: i32) -> (i32, i32, i32) {
    %c0_i32 = arith.constant 0 : i32
    %c0_i32_0 = arith.constant 0 : i32
    return %arg0, %arg1, %c0_i32 : i32, i32, i32
  }
  func.func @transform_1(%arg0: i32, %arg1: i32) -> (i32, i32, i32) {
    %c0_i32 = arith.constant 0 : i32
    %c0_i32_0 = arith.constant 0 : i32
    %c0_i32_1 = arith.constant 0 : i32
    return %c0_i32, %arg1, %c0_i32_0 : i32, i32, i32
  }
  func.func @transform_2(%arg0: i32, %arg1: i32) -> (i32, i32) {
    %c0_i32 = arith.constant 0 : i32
    %c0_i32_0 = arith.constant 0 : i32
    %c0_i32_1 = arith.constant 0 : i32
    return %c0_i32, %c0_i32_0 : i32, i32
  }
  func.func @transform_3(%arg0: i32, %arg1: i32) -> (i32, i32) {
    %c0_i32 = arith.constant 0 : i32
    %c0_i32_0 = arith.constant 0 : i32
    %c0_i32_1 = arith.constant 0 : i32
    return %c0_i32, %c0_i32_0 : i32, i32
  }
  func.func @transform_4(%arg0: i32, %arg1: i32) -> (i32, i32) {
    %c0_i32 = arith.constant 0 : i32
    %c0_i32_0 = arith.constant 0 : i32
    %c0_i32_1 = arith.constant 0 : i32
    return %c0_i32, %c0_i32_0 : i32, i32
  }
  func.func @transform_5(%arg0: i32, %arg1: i32) -> (i32, i32, i32) {
    %c0_i32 = arith.constant 0 : i32
    %c0_i32_0 = arith.constant 0 : i32
    return %arg0, %arg1, %c0_i32 : i32, i32, i32
  }
}

</mosaic_0001>

<bundles_post_ra>
// kernel: tpu_custom_call.1
= control target key start
LH: loop header
LB: loop body
LE: loop exit
PB: predicated region body
PF: predicated region fallthrough
CT: control target
= control target key end

     0   :  { %s1035_s0 = inlined_call_operand.hbm [shape: f32[2,8,32], index: 0, kind: input, shape index: {}]   ;;  %s1036_s1 = inlined_call_operand.hbm [shape: f32[1,8,32], index: 1, kind: input, shape index: {}]   ;;  %s1037_s2 = inlined_call_operand.vmem [shape: f32[1,32], index: 2, kind: input, shape index: {}]   ;;  %s1038_s3 = inlined_call_operand.vmem [shape: f32[1,32], index: 3, kind: input, shape index: {}]   ;;  %s1039_s4 = inlined_call_operand.hbm [shape: bf16[32,32], index: 4, kind: input, shape index: {}]   ;;  %s1040_s5 = inlined_call_operand.hbm [shape: bf16[2,8,32], index: 5, kind: output, shape index: {}]  }
   0x1   :  { %1045 = sst [smem:[#allocation12_spill]] %s1036_s1 }
   0x2   :  { %10 = vsyncpa [#allocation3], 0 }
   0x3   :  { %12 = vsyncpa [#allocation3 + $0x1], 0 }
   0x4   :  { %13 = vsyncpa [#allocation6], 0 }
   0x5   :  { %14 = vsyncpa [#allocation4], 0 }
   0x6   :  { %16 = vsyncpa [#allocation4 + $0x1], 0  ;;  %s837_s18 = smov 0   ;;  %s839_s19 = smov 0  }
   0x7   :  { %s841_s20 = smov 0   ;;  %s843_s21 = smov 0  }
   0x8   :  { %s845_s22 = smov 0   ;;  %s847_s23 = smov 0  }
   0x9 LB: > { %s509_s24 = sadd.s32 4294967295, %s797_s23   ;;  %s510_s25 = sadd.s32 4294967294, %s797_s23   ;;  %s797_s23 = sphi %s847_s23, %s22_s23   ;;  %s793_s22 = sphi %s845_s22, %s1065_s22   ;;  %s789_s21 = sphi %s843_s21, %s1064_s21   ;;  %s785_s20 = sphi %s841_s20, %s1063_s20   ;;  %s781_s19 = sphi %s839_s19, %s1062_s19   ;;  %s777_s18 = sphi %s837_s18, %s1061_s18  }
   0xa   : > { %p56_p0 = scmp.ne.s32.totalorder %s781_s19, %s777_s18  ;;  %p871_p1 = scmp.eq.s32.totalorder %s509_s24, 0 }
   0xb   : > { %p875_p2 = scmp.eq.s32.totalorder %s509_s24, 1  ;;  %p177_p3 = scmp.eq.s32.totalorder %s510_s25, 1 }
   0xc   : > { %s1046_s26 = scalar_select %p871_p1, 1, 0 }
   0xd   : > { %s1047_s27 = scalar_select %p875_p2, 1, 0 }
   0xe   : > { %p881_p4 = por %p871_p1, %p56_p0  ;;  %p511_p5 = scmp.ge.s32.totalorder %s797_s23, 1 }
   0xf   : > { %p886_p6 = por %p177_p3, %p56_p0  ;;  %p184_p7 = scmp.lt.s32.totalorder %s797_s23, 3 }
  0x10   : > { %s1048_s28 = scalar_select %p881_p4, 1, 0 }
  0x11   : > { %s1049_s29 = scalar_select %p886_p6, 1, 0 }
  0x12   : > { %p891_p8 = pnand %p511_p5, %p184_p7  ;;  %s799_s6 = smov [#allocation5]  }
  0x13   : > { %s199_s7 = sshll.u32 %s799_s6, 4  ;;  %s800_s8 = smov [#allocation7]   ;;  %s200_s7 = int_to_ptr.vmem [resolvable:$true] %s199_s7 }
  0x14   : > { %s1050_s30 = scalar_select %p891_p8, 1, 0 }
  0x15   : > { %p554_p10 = pneg %p891_p8  ;;  %s215_s9 = sshll.u32 %s800_s8, 4  ;;  %s216_s9 = int_to_ptr.vmem [resolvable:$true] %s215_s9 }
  0x16   : > { %s644_s11 = scalar_lea.vmem %s200_s7, 128  ;;  %p652_p5 = scmp.lt.s32.totalorder %s200_s7, %s200_s7 }
  0x17   : > { %p900_p11 = pnand %p554_p10, %p871_p1  ;;  %p645_p13 = scmp.ne.s32.totalorder %s200_s7, %s644_s11 }
  0x18   : > { %p653_p7 = scmp.lt.s32.totalorder %s644_s11, %s644_s11 }
  0x19   : > { %p635_p12 = pneg %p900_p11 }
  0x1a   : > { %p654_p9 = por %p653_p7, %p652_p5 }
  0x1b   : > { %p647_p0 = pnand %p645_p13, %p635_p12 }
  0x1d   : > { %p648_p3 = pneg %p647_p0 }
  0x1f   : > { %p655_p6 = pnand %p654_p9, %p648_p3 }
  0x21   : > { %658 = shalt.err (!%p655_p6)
}
  0x22   : > { %s1052_s1 = sld [smem:[#allocation12_spill]]  ;;  %s670_s14 = scalar_lea.vmem %s216_s9, 256 }
  0x23   : > { %p671_p10 = scmp.ne.s32.totalorder %s216_s9, %s670_s14  ;;  %p678_p13 = scmp.lt.s32.totalorder %s216_s9, %s216_s9 }
  0x24   : > { %p679_p0 = scmp.lt.s32.totalorder %s670_s14, %s670_s14 }
  0x25   : > { %p673_p1 = pnand %p671_p10, %p635_p12 }
  0x26   : > { %p680_p8 = por %p679_p0, %p678_p13 }
  0x27   : > { %p674_p4 = pneg %p673_p1 }
  0x28   : > { %557 = dma.hbm_to_vmem [thread:$0]  (!%p900_p11), %s1052_s1, 128, %s200_s7, [#allocation6]  }
  0x29   : > { %p681_p2 = pnand %p680_p8, %p674_p4 }
  0x2b   : > { %684 = shalt.err (!%p681_p2)
}
  0x2c   : > { %s801_s15 = smov 64   ;;  %s802_s16 = smov 4  }
  0x2d   : > { %560 = dma.hbm_to_vmem [thread:$0]  (!%p900_p11), %s1039_s4, 256, %s216_s9, [#allocation6], %s801_s15, %s801_s15, %s802_s16  }
  0x2e   : > { %s34_s25 = sadd.s32 1, %s793_s22  ;;  %s43_s6 = sadd.s32 1, %s785_s20 }
  0x2f   : > { %p36_p1 = scmp.ge.s32.totalorder %s34_s25, 2  ;;  %p50_p2 = scmp.ne.s32.totalorder %s785_s20, %s781_s19 }
  0x30   : > { %p51_p4 = scmp.eq.s32.totalorder %s797_s23, 0  ;;  %p571_p6 = scmp.lt.s32.totalorder %s797_s23, 2 }
  0x31   : > { %s1067_s25 = smov (%p36_p1, %s34_s25), 0  ;;  %p1053_p9 = scmp.ne.s32.totalorder %s1047_s27, 0 }
  0x32   : > { %p52_p8 = por %p51_p4, %p50_p2  ;;  %s38_s8 = ssub.s32 %s793_s22, %s1067_s25 }
  0x33   : > { %p932_p12 = por %p1053_p9, %p50_p2  ;;  %s229_s10 = sand.u32 1, %s785_s20  }
  0x34   : > { %p41_p3 = scmp.eq.s32.totalorder %s38_s8, 0  ;;  %s515_s9 = sshll.u32 %s229_s10, 3 }
  0x35   : > { %s516_s11 = sshll.u32 %s793_s22, 7  ;;  %s233_s16 = scalar_lea.vmem [#allocation2], %s515_s9 }
  0x36   : > { %s941_s12 = scalar_select %p41_p3, %s785_s20, %s43_s6  }
  0x37   : > { %s239_s15 = scalar_lea.hbm %s1035_s0, %s516_s11  ;;  %s241_s17 = sshll.u32 %s233_s16, 4  ;;  %s242_s17 = int_to_ptr.vmem [resolvable:$true] %s241_s17 }
  0x38   : > { %p948_p11 = pnand %p571_p6, %p52_p8  ;;  %s230_s24 = scalar_lea.sflag [#allocation3], %s229_s10 }
  0x39   : > { %s698_s8 = scalar_lea.vmem %s242_s17, 128  ;;  %s803_s6 = smov [#allocation2]  }
  0x3a   : > { %p687_p5 = pneg %p948_p11  ;;  %p699_p7 = scmp.ne.s32.totalorder %s242_s17, %s698_s8 }
  0x3b   : > { %s703_s1 = sshll.u32 %s803_s6, 4  ;;  %s704_s1 = int_to_ptr.vmem [resolvable:$false] %s703_s1 }
  0x3c   : > { %p701_p10 = pnand %p699_p7, %p687_p5  ;;  %s705_s11 = scalar_lea.vmem %s704_s1, 256 }
  0x3d   : > { %p706_p0 = scmp.lt.s32.totalorder %s242_s17, %s704_s1  ;;  %p707_p1 = scmp.lt.s32.totalorder %s705_s11, %s698_s8 }
  0x3e   : > { %p702_p13 = pneg %p701_p10 }
  0x3f   : > { %p708_p2 = por %p707_p1, %p706_p0 }
  0x41   : > { %p709_p4 = pnand %p708_p2, %p702_p13 }
  0x43   : > { %712 = shalt.err (!%p709_p4)
}
  0x44   : > { %564 = dma.hbm_to_vmem [thread:$0]  (!%p948_p11), %s239_s15, 128, %s242_s17, %s230_s24  }
  0x45   : > { %p1056_p6 = scmp.ne.s32.totalorder %s1050_s30, 0 }
  0x46   : > { %s959_s10 = sand.u32 (!%p1056_p6), 1, %s781_s19   ;;  %p1057_p8 = scmp.ne.s32.totalorder (!%p1056_p6), %s1048_s28, 0 }
  0x47   : > { %250 = sbr.rel (%p1056_p6) target bundleno = 602 (0x25a), region = 40  ;;  %s518_s9 = sshll.u32 (!%p1056_p6), %s959_s10, 3 }
  0x48   : > { %s253_s13 = scalar_lea.sflag (!%p1056_p6), [#allocation3], %s959_s10  ;;  %s256_s14 = scalar_lea.vmem (!%p1056_p6), [#allocation2], %s518_s9 }
  0x4c   : > { %764 = dma.done.wait (%p1057_p8), %s253_s13, 128  }
  0x4d   : > { %766 = vsyncadd (%p1057_p8), %s253_s13, 4294967168  ;;  %p1058_p9 = scmp.ne.s32.totalorder %s1046_s26, 0 }
  0x4f   : > { %768 = dma.done.wait (%p1058_p9), [#allocation6], 384  }
  0x50   : > { %770 = vsyncadd (%p1058_p9), [#allocation6], 4294966912  ;;  %v292_v0 = vld [vmem:[%s256_s14] sm:$0xff]  ;;  %v293_v1 = vld [vmem:[#allocation5] sm:$0xff]  ;;  %vm297_vm0 = vcmask 261120   ;;  %v804_v10 = vmov 0.0  }
  0x51   : > { %v294_v2 = vadd.f32 %v293_v1, %v292_v0  ;;  %v629_v9 = vld [vmem:[#allocation7 + $0x8] sm:$0xff]   ;;  %534 = vmatprep.subr.bf16.mxu0 %v804_v10  ;;  %vm805_vm1 = vmmov 0   ;;  %v630_v12 = vld [vmem:[#allocation7] sm:$0xff]   ;;  %s521_s15 = sshll.u32 %s959_s10, 2  ;;  %s528_s16 = sshll.u32 %s789_s21, 6  ;;  %vm391_vm2 = vcmask 257024  }
  0x52   : > { %538 = vmatprep.mubr.msk.bf16.mxu0 %vm805_vm1, %v804_v10  ;;  %v348_v11 = vsel %vm297_vm0, %v629_v9, 0  ;;  %v345_v13 = vsel %vm297_vm0, %v630_v12, 0  ;;  %v522_v18 = vld [vmem:[%s1037_s2] ss:$0 sm:$0xff]  ;;  %s290_s17 = scalar_lea.vmem [#allocation8], %s521_s15  ;;  %s987_s6 = scalar_lea.hbm %s1040_s5, %s528_s16 }
  0x53   : > { %v298_v3 = vsel %vm297_vm0, %v294_v2, 0.0  ;;  %535 = vmatpush3.bf16.xpose.msra.mxu0 %v348_v11  ;;  %v523_v20 = vld [vmem:[%s1038_s3] ss:$0 sm:$0xff]  ;;  %s408_s27 = sshll.u32 %s290_s17, 4  ;;  %s394_s11 = scalar_lea.sflag [#allocation4], %s959_s10  ;;  %s989_s27 = int_to_ptr.vmem [resolvable:$true] %s408_s27 }
  0x54   : > { %299 = vadd.xlane.f32.xlu0 %v298_v3  ;;  %536 = vmatprep.subr.bf16.mxu0 %v804_v10  ;;  %s713_s21 = scalar_lea.vmem %s989_s27, 64  ;;  %s806_s9 = smov [#allocation8]  }
  0x55   : > { %p714_p3 = scmp.ne.s32.totalorder %s989_s27, %s713_s21  ;;  %s717_s13 = sshll.u32 %s806_s9, 4  ;;  %s718_s13 = int_to_ptr.vmem [resolvable:$false] %s717_s13 }
  0x56   : > { %s719_s14 = scalar_lea.vmem %s718_s13, 128  ;;  %p720_p7 = scmp.lt.s32.totalorder %s989_s27, %s718_s13 }
  0x57   : > { %p715_p11 = pnand %p714_p3, %p932_p12  ;;  %p721_p10 = scmp.lt.s32.totalorder %s719_s14, %s713_s21 }
  0x59   : > { %p716_p5 = pneg %p715_p11  ;;  %p722_p13 = por %p721_p10, %p720_p7 }
  0x5b   : > { %537 = vmatpush3.bf16.xpose.msra.mxu0 %v345_v13  ;;  %p723_p0 = pnand %p722_p13, %p716_p5 }
  0xdd   : > { %v300_v4 = vpop.xlane.xlu0 %299 }
  0xde   : > { %v302_v5 = vmul.f32 0.03125, %v300_v4 }
  0xe0   : > { %v303_v6 = vsub.f32 %v294_v2, %v302_v5 }
  0xe2   : > { %v304_v7 = vmul.f32 %v303_v6, %v303_v6 }
  0xe4   : > { %v305_v8 = vsel %vm297_vm0, %v304_v7, 0.0 }
  0xe5   : > { %306 = vadd.xlane.f32.xlu0 %v305_v8 }
 0x16e   : > { %v307_v14 = vpop.xlane.xlu0 %306 }
 0x16f   : > { %v308_v15 = vmul.f32 0.03125, %v307_v14 }
 0x171   : > { %v309_v16 = vadd.f32 1e-05, %v308_v15 }
 0x173   : > { %631 = vrsqrt.f32 %v309_v16 }
 0x180   : > { %v632_v17 = vpop.eup %631 }
 0x181   : > { %v311_v19 = vmul.f32 %v632_v17, %v303_v6 }
 0x183   : > { %v318_v21 = vmul.f32 %v522_v18, %v311_v19 }
 0x185   : > { %v325_v22 = vadd.f32 %v523_v20, %v318_v21 }
 0x187   : > { %v326_v23 = vpack.c.bf16 %v325_v22, %v325_v22 }
 0x189   : > { %539 = vmatmul.mubr.msk.bf16.vlgmr.msra.gmra.mxu0 %vm297_vm0, %v326_v23 }
 0x249   : > { %v384_v24 = vpop.f32.mrf.mxu0 }
 0x24a   : > { %v390_v25 = vpack.c.bf16 %v384_v24, %v384_v24 }
 0x24b   : > { %v540_v26 = vpop.f32.mrf.mxu0 }
 0x24c   : > { %392 = vst.msk [vmem:[%s290_s17] sm:$0xf] %vm391_vm2, %v390_v25 }
 0x24d   : > { %v387_v27 = vpop.f32.mrf.mxu0 }
 0x24e   : > { %726 = shalt.err (!%p723_p0)
}
 0x24f   : > { %s727_s1 = scalar_lea.hbm %s987_s6, 64  ;;  %s731_s28 = scalar_lea.hbm %s1040_s5, 128 }
 0x250   : > { %p728_p1 = scmp.ne.s32.totalorder %s987_s6, %s727_s1  ;;  %p732_p6 = scmp.lt.s32.totalorder %s987_s6, %s1040_s5 }
 0x251   : > { %p733_p8 = scmp.lt.s32.totalorder %s731_s28, %s727_s1 }
 0x252   : > { %p729_p2 = pnand %p728_p1, %p932_p12 }
 0x253   : > { %p734_p9 = por %p733_p8, %p732_p6 }
 0x254   : > { %p730_p4 = pneg %p729_p2 }
 0x256   : > { %p735_p3 = pnand %p734_p9, %p730_p4 }
 0x258   : > { %738 = shalt.err (!%p735_p3)
}
 0x259   : > { %552 = dma.vmem_to_hbm [thread:$0]  (%p932_p12), %s989_s27, 64, %s987_s6, %s394_s11   ;;  %v541_v28 = vpop.f32.mrf.mxu0 }
 0x25a PF: > { %s420_s16 = sand.u32 1, %s777_s18   ;;  %p1059_p11 = scmp.ne.s32.totalorder %s1049_s29, 0 }
 0x25b   : > { %p1060_p5 = scmp.ge.s32.totalorder %s797_s23, 2  ;;  %s421_s17 = scalar_lea.sflag [#allocation4], %s420_s16 }
 0x25d   : > { %p566_p7 = pnand %p1060_p5, %p1059_p11 }
 0x25f   : > { %p567_p10 = pneg %p566_p7 }
 0x261   : > { %772 = dma.done.wait (%p567_p10), %s421_s17, 64  }
 0x262   : > { %774 = vsyncadd (%p567_p10), %s421_s17, 4294967232  ;;  %s22_s23 = sadd.s32 1, %s797_s23   ;;  %s1061_s18 = smov %s781_s19 }
 0x263   : > { %p19_p13 = scmp.ge.s32.totalorder %s22_s23, 4   ;;  %s1062_s19 = smov %s785_s20 }
 0x264   : > { %s1063_s20 = smov %s941_s12  ;;  %s1064_s21 = smov %s793_s22 }
 0x265   : > { %s1065_s22 = smov %s1067_s25  ;;  %21 = sbr.rel (!%p19_p13) target bundleno = 9 (0x9), region = 94 }
 0x26a   :  { %426 = vsyncpa [#allocation3], 1 }
 0x26b   :  { %428 = vsyncpa [#allocation3 + $0x1], 1 }
 0x26c   :  { %429 = vsyncpa [#allocation6], 1 }
 0x26d   :  { %430 = vsyncpa [#allocation4], 1 }
 0x26e   :  { %432 = vsyncpa [#allocation4 + $0x1], 1 }

// kernel: tpu_custom_call.1
= control target key start
LH: loop header
LB: loop body
LE: loop exit
PB: predicated region body
PF: predicated region fallthrough
CT: control target
= control target key end

     0   :  { %s1035_s0 = inlined_call_operand.hbm [shape: f32[2,8,32], index: 0, kind: input, shape index: {}]   ;;  %s1036_s1 = inlined_call_operand.hbm [shape: f32[1,8,32], index: 1, kind: input, shape index: {}]   ;;  %s1037_s2 = inlined_call_operand.vmem [shape: f32[1,32], index: 2, kind: input, shape index: {}]   ;;  %s1038_s3 = inlined_call_operand.vmem [shape: f32[1,32], index: 3, kind: input, shape index: {}]   ;;  %s1039_s4 = inlined_call_operand.hbm [shape: bf16[32,32], index: 4, kind: input, shape index: {}]   ;;  %s1040_s5 = inlined_call_operand.hbm [shape: bf16[2,8,32], index: 5, kind: output, shape index: {}]  }
   0x1   :  { %1045 = sst [smem:[#allocation12_spill]] %s1036_s1 }
   0x2   :  { %10 = vsyncpa [#allocation3], 0 }
   0x3   :  { %12 = vsyncpa [#allocation3 + $0x1], 0 }
   0x4   :  { %13 = vsyncpa [#allocation6], 0 }
   0x5   :  { %14 = vsyncpa [#allocation4], 0 }
   0x6   :  { %16 = vsyncpa [#allocation4 + $0x1], 0  ;;  %s837_s18 = smov 0   ;;  %s839_s19 = smov 0  }
   0x7   :  { %s841_s20 = smov 0   ;;  %s843_s21 = smov 0  }
   0x8   :  { %s845_s22 = smov 0   ;;  %s847_s23 = smov 0  }
   0x9 LB: > { %s509_s24 = sadd.s32 4294967295, %s797_s23   ;;  %s510_s25 = sadd.s32 4294967294, %s797_s23   ;;  %s797_s23 = sphi %s847_s23, %s22_s23   ;;  %s793_s22 = sphi %s845_s22, %s1065_s22   ;;  %s789_s21 = sphi %s843_s21, %s1064_s21   ;;  %s785_s20 = sphi %s841_s20, %s1063_s20   ;;  %s781_s19 = sphi %s839_s19, %s1062_s19   ;;  %s777_s18 = sphi %s837_s18, %s1061_s18  }
   0xa   : > { %p56_p0 = scmp.ne.s32.totalorder %s781_s19, %s777_s18  ;;  %p871_p1 = scmp.eq.s32.totalorder %s509_s24, 0 }
   0xb   : > { %p875_p2 = scmp.eq.s32.totalorder %s509_s24, 1  ;;  %p177_p3 = scmp.eq.s32.totalorder %s510_s25, 1 }
   0xc   : > { %s1046_s26 = scalar_select %p871_p1, 1, 0 }
   0xd   : > { %s1047_s27 = scalar_select %p875_p2, 1, 0 }
   0xe   : > { %p881_p4 = por %p871_p1, %p56_p0  ;;  %p511_p5 = scmp.ge.s32.totalorder %s797_s23, 1 }
   0xf   : > { %p886_p6 = por %p177_p3, %p56_p0  ;;  %p184_p7 = scmp.lt.s32.totalorder %s797_s23, 3 }
  0x10   : > { %s1048_s28 = scalar_select %p881_p4, 1, 0 }
  0x11   : > { %s1049_s29 = scalar_select %p886_p6, 1, 0 }
  0x12   : > { %p891_p8 = pnand %p511_p5, %p184_p7  ;;  %s799_s6 = smov [#allocation5]  }
  0x13   : > { %s199_s7 = sshll.u32 %s799_s6, 4  ;;  %s800_s8 = smov [#allocation7]   ;;  %s200_s7 = int_to_ptr.vmem [resolvable:$true] %s199_s7 }
  0x14   : > { %s1050_s30 = scalar_select %p891_p8, 1, 0 }
  0x15   : > { %p554_p10 = pneg %p891_p8  ;;  %s215_s9 = sshll.u32 %s800_s8, 4  ;;  %s216_s9 = int_to_ptr.vmem [resolvable:$true] %s215_s9 }
  0x16   : > { %s644_s11 = scalar_lea.vmem %s200_s7, 128  ;;  %p652_p5 = scmp.lt.s32.totalorder %s200_s7, %s200_s7 }
  0x17   : > { %p900_p11 = pnand %p554_p10, %p871_p1  ;;  %p645_p13 = scmp.ne.s32.totalorder %s200_s7, %s644_s11 }
  0x18   : > { %p653_p7 = scmp.lt.s32.totalorder %s644_s11, %s644_s11 }
  0x19   : > { %p635_p12 = pneg %p900_p11 }
  0x1a   : > { %p654_p9 = por %p653_p7, %p652_p5 }
  0x1b   : > { %p647_p0 = pnand %p645_p13, %p635_p12 }
  0x1d   : > { %p648_p3 = pneg %p647_p0 }
  0x1f   : > { %p655_p6 = pnand %p654_p9, %p648_p3 }
  0x21   : > { %658 = shalt.err (!%p655_p6)
}
  0x22   : > { %s1052_s1 = sld [smem:[#allocation12_spill]]  ;;  %s670_s14 = scalar_lea.vmem %s216_s9, 256 }
  0x23   : > { %p671_p10 = scmp.ne.s32.totalorder %s216_s9, %s670_s14  ;;  %p678_p13 = scmp.lt.s32.totalorder %s216_s9, %s216_s9 }
  0x24   : > { %p679_p0 = scmp.lt.s32.totalorder %s670_s14, %s670_s14 }
  0x25   : > { %p673_p1 = pnand %p671_p10, %p635_p12 }
  0x26   : > { %p680_p8 = por %p679_p0, %p678_p13 }
  0x27   : > { %p674_p4 = pneg %p673_p1 }
  0x28   : > { %557 = dma.hbm_to_vmem [thread:$0]  (!%p900_p11), %s1052_s1, 128, %s200_s7, [#allocation6]  }
  0x29   : > { %p681_p2 = pnand %p680_p8, %p674_p4 }
  0x2b   : > { %684 = shalt.err (!%p681_p2)
}
  0x2c   : > { %s801_s15 = smov 64   ;;  %s802_s16 = smov 4  }
  0x2d   : > { %560 = dma.hbm_to_vmem [thread:$0]  (!%p900_p11), %s1039_s4, 256, %s216_s9, [#allocation6], %s801_s15, %s801_s15, %s802_s16  }
  0x2e   : > { %s34_s25 = sadd.s32 1, %s793_s22  ;;  %s43_s6 = sadd.s32 1, %s785_s20 }
  0x2f   : > { %p36_p1 = scmp.ge.s32.totalorder %s34_s25, 2  ;;  %p50_p2 = scmp.ne.s32.totalorder %s785_s20, %s781_s19 }
  0x30   : > { %p51_p4 = scmp.eq.s32.totalorder %s797_s23, 0  ;;  %p571_p6 = scmp.lt.s32.totalorder %s797_s23, 2 }
  0x31   : > { %s1067_s25 = smov (%p36_p1, %s34_s25), 0  ;;  %p1053_p9 = scmp.ne.s32.totalorder %s1047_s27, 0 }
  0x32   : > { %p52_p8 = por %p51_p4, %p50_p2  ;;  %s38_s8 = ssub.s32 %s793_s22, %s1067_s25 }
  0x33   : > { %p932_p12 = por %p1053_p9, %p50_p2  ;;  %s229_s10 = sand.u32 1, %s785_s20  }
  0x34   : > { %p41_p3 = scmp.eq.s32.totalorder %s38_s8, 0  ;;  %s515_s9 = sshll.u32 %s229_s10, 3 }
  0x35   : > { %s516_s11 = sshll.u32 %s793_s22, 7  ;;  %s233_s16 = scalar_lea.vmem [#allocation2], %s515_s9 }
  0x36   : > { %s941_s12 = scalar_select %p41_p3, %s785_s20, %s43_s6  }
  0x37   : > { %s239_s15 = scalar_lea.hbm %s1035_s0, %s516_s11  ;;  %s241_s17 = sshll.u32 %s233_s16, 4  ;;  %s242_s17 = int_to_ptr.vmem [resolvable:$true] %s241_s17 }
  0x38   : > { %p948_p11 = pnand %p571_p6, %p52_p8  ;;  %s230_s24 = scalar_lea.sflag [#allocation3], %s229_s10 }
  0x39   : > { %s698_s8 = scalar_lea.vmem %s242_s17, 128  ;;  %s803_s6 = smov [#allocation2]  }
  0x3a   : > { %p687_p5 = pneg %p948_p11  ;;  %p699_p7 = scmp.ne.s32.totalorder %s242_s17, %s698_s8 }
  0x3b   : > { %s703_s1 = sshll.u32 %s803_s6, 4  ;;  %s704_s1 = int_to_ptr.vmem [resolvable:$false] %s703_s1 }
  0x3c   : > { %p701_p10 = pnand %p699_p7, %p687_p5  ;;  %s705_s11 = scalar_lea.vmem %s704_s1, 256 }
  0x3d   : > { %p706_p0 = scmp.lt.s32.totalorder %s242_s17, %s704_s1  ;;  %p707_p1 = scmp.lt.s32.totalorder %s705_s11, %s698_s8 }
  0x3e   : > { %p702_p13 = pneg %p701_p10 }
  0x3f   : > { %p708_p2 = por %p707_p1, %p706_p0 }
  0x41   : > { %p709_p4 = pnand %p708_p2, %p702_p13 }
  0x43   : > { %712 = shalt.err (!%p709_p4)
}
  0x44   : > { %564 = dma.hbm_to_vmem [thread:$0]  (!%p948_p11), %s239_s15, 128, %s242_s17, %s230_s24  }
  0x45   : > { %p1056_p6 = scmp.ne.s32.totalorder %s1050_s30, 0 }
  0x46   : > { %s959_s10 = sand.u32 (!%p1056_p6), 1, %s781_s19   ;;  %p1057_p8 = scmp.ne.s32.totalorder (!%p1056_p6), %s1048_s28, 0 }
  0x47   : > { %250 = sbr.rel (%p1056_p6) target bundleno = 602 (0x25a), region = 40  ;;  %s518_s9 = sshll.u32 (!%p1056_p6), %s959_s10, 3 }
  0x48   : > { %s253_s13 = scalar_lea.sflag (!%p1056_p6), [#allocation3], %s959_s10  ;;  %s256_s14 = scalar_lea.vmem (!%p1056_p6), [#allocation2], %s518_s9 }
  0x4c   : > { %764 = dma.done.wait (%p1057_p8), %s253_s13, 128  }
  0x4d   : > { %766 = vsyncadd (%p1057_p8), %s253_s13, 4294967168  ;;  %p1058_p9 = scmp.ne.s32.totalorder %s1046_s26, 0 }
  0x4f   : > { %768 = dma.done.wait (%p1058_p9), [#allocation6], 384  }
  0x50   : > { %770 = vsyncadd (%p1058_p9), [#allocation6], 4294966912  ;;  %v292_v0 = vld [vmem:[%s256_s14] sm:$0xff]  ;;  %v293_v1 = vld [vmem:[#allocation5] sm:$0xff]  ;;  %vm297_vm0 = vcmask 261120   ;;  %v804_v10 = vmov 0.0  }
  0x51   : > { %v294_v2 = vadd.f32 %v293_v1, %v292_v0  ;;  %v629_v9 = vld [vmem:[#allocation7 + $0x8] sm:$0xff]   ;;  %534 = vmatprep.subr.bf16.mxu0 %v804_v10  ;;  %vm805_vm1 = vmmov 0   ;;  %v630_v12 = vld [vmem:[#allocation7] sm:$0xff]   ;;  %s521_s15 = sshll.u32 %s959_s10, 2  ;;  %s528_s16 = sshll.u32 %s789_s21, 6  ;;  %vm391_vm2 = vcmask 257024  }
  0x52   : > { %538 = vmatprep.mubr.msk.bf16.mxu0 %vm805_vm1, %v804_v10  ;;  %v348_v11 = vsel %vm297_vm0, %v629_v9, 0  ;;  %v345_v13 = vsel %vm297_vm0, %v630_v12, 0  ;;  %v522_v18 = vld [vmem:[%s1037_s2] ss:$0 sm:$0xff]  ;;  %s290_s17 = scalar_lea.vmem [#allocation8], %s521_s15  ;;  %s987_s6 = scalar_lea.hbm %s1040_s5, %s528_s16 }
  0x53   : > { %v298_v3 = vsel %vm297_vm0, %v294_v2, 0.0  ;;  %535 = vmatpush3.bf16.xpose.msra.mxu0 %v348_v11  ;;  %v523_v20 = vld [vmem:[%s1038_s3] ss:$0 sm:$0xff]  ;;  %s408_s27 = sshll.u32 %s290_s17, 4  ;;  %s394_s11 = scalar_lea.sflag [#allocation4], %s959_s10  ;;  %s989_s27 = int_to_ptr.vmem [resolvable:$true] %s408_s27 }
  0x54   : > { %299 = vadd.xlane.f32.xlu0 %v298_v3  ;;  %536 = vmatprep.subr.bf16.mxu0 %v804_v10  ;;  %s713_s21 = scalar_lea.vmem %s989_s27, 64  ;;  %s806_s9 = smov [#allocation8]  }
  0x55   : > { %p714_p3 = scmp.ne.s32.totalorder %s989_s27, %s713_s21  ;;  %s717_s13 = sshll.u32 %s806_s9, 4  ;;  %s718_s13 = int_to_ptr.vmem [resolvable:$false] %s717_s13 }
  0x56   : > { %s719_s14 = scalar_lea.vmem %s718_s13, 128  ;;  %p720_p7 = scmp.lt.s32.totalorder %s989_s27, %s718_s13 }
  0x57   : > { %p715_p11 = pnand %p714_p3, %p932_p12  ;;  %p721_p10 = scmp.lt.s32.totalorder %s719_s14, %s713_s21 }
  0x59   : > { %p716_p5 = pneg %p715_p11  ;;  %p722_p13 = por %p721_p10, %p720_p7 }
  0x5b   : > { %537 = vmatpush3.bf16.xpose.msra.mxu0 %v345_v13  ;;  %p723_p0 = pnand %p722_p13, %p716_p5 }
  0xdd   : > { %v300_v4 = vpop.xlane.xlu0 %299 }
  0xde   : > { %v302_v5 = vmul.f32 0.03125, %v300_v4 }
  0xe0   : > { %v303_v6 = vsub.f32 %v294_v2, %v302_v5 }
  0xe2   : > { %v304_v7 = vmul.f32 %v303_v6, %v303_v6 }
  0xe4   : > { %v305_v8 = vsel %vm297_vm0, %v304_v7, 0.0 }
  0xe5   : > { %306 = vadd.xlane.f32.xlu0 %v305_v8 }
 0x16e   : > { %v307_v14 = vpop.xlane.xlu0 %306 }
 0x16f   : > { %v308_v15 = vmul.f32 0.03125, %v307_v14 }
 0x171   : > { %v309_v16 = vadd.f32 1e-05, %v308_v15 }
 0x173   : > { %631 = vrsqrt.f32 %v309_v16 }
 0x180   : > { %v632_v17 = vpop.eup %631 }
 0x181   : > { %v311_v19 = vmul.f32 %v632_v17, %v303_v6 }
 0x183   : > { %v318_v21 = vmul.f32 %v522_v18, %v311_v19 }
 0x185   : > { %v325_v22 = vadd.f32 %v523_v20, %v318_v21 }
 0x187   : > { %v326_v23 = vpack.c.bf16 %v325_v22, %v325_v22 }
 0x189   : > { %539 = vmatmul.mubr.msk.bf16.vlgmr.msra.gmra.mxu0 %vm297_vm0, %v326_v23 }
 0x249   : > { %v384_v24 = vpop.f32.mrf.mxu0 }
 0x24a   : > { %v390_v25 = vpack.c.bf16 %v384_v24, %v384_v24 }
 0x24b   : > { %v540_v26 = vpop.f32.mrf.mxu0 }
 0x24c   : > { %392 = vst.msk [vmem:[%s290_s17] sm:$0xf] %vm391_vm2, %v390_v25 }
 0x24d   : > { %v387_v27 = vpop.f32.mrf.mxu0 }
 0x24e   : > { %726 = shalt.err (!%p723_p0)
}
 0x24f   : > { %s727_s1 = scalar_lea.hbm %s987_s6, 64  ;;  %s731_s28 = scalar_lea.hbm %s1040_s5, 128 }
 0x250   : > { %p728_p1 = scmp.ne.s32.totalorder %s987_s6, %s727_s1  ;;  %p732_p6 = scmp.lt.s32.totalorder %s987_s6, %s1040_s5 }
 0x251   : > { %p733_p8 = scmp.lt.s32.totalorder %s731_s28, %s727_s1 }
 0x252   : > { %p729_p2 = pnand %p728_p1, %p932_p12 }
 0x253   : > { %p734_p9 = por %p733_p8, %p732_p6 }
 0x254   : > { %p730_p4 = pneg %p729_p2 }
 0x256   : > { %p735_p3 = pnand %p734_p9, %p730_p4 }
 0x258   : > { %738 = shalt.err (!%p735_p3)
}
 0x259   : > { %552 = dma.vmem_to_hbm [thread:$0]  (%p932_p12), %s989_s27, 64, %s987_s6, %s394_s11   ;;  %v541_v28 = vpop.f32.mrf.mxu0 }
 0x25a PF: > { %s420_s16 = sand.u32 1, %s777_s18   ;;  %p1059_p11 = scmp.ne.s32.totalorder %s1049_s29, 0 }
 0x25b   : > { %p1060_p5 = scmp.ge.s32.totalorder %s797_s23, 2  ;;  %s421_s17 = scalar_lea.sflag [#allocation4], %s420_s16 }
 0x25d   : > { %p566_p7 = pnand %p1060_p5, %p1059_p11 }
 0x25f   : > { %p567_p10 = pneg %p566_p7 }
 0x261   : > { %772 = dma.done.wait (%p567_p10), %s421_s17, 64  }
 0x262   : > { %774 = vsyncadd (%p567_p10), %s421_s17, 4294967232  ;;  %s22_s23 = sadd.s32 1, %s797_s23   ;;  %s1061_s18 = smov %s781_s19 }
 0x263   : > { %p19_p13 = scmp.ge.s32.totalorder %s22_s23, 4   ;;  %s1062_s19 = smov %s785_s20 }
 0x264   : > { %s1063_s20 = smov %s941_s12  ;;  %s1064_s21 = smov %s793_s22 }
 0x265   : > { %s1065_s22 = smov %s1067_s25  ;;  %21 = sbr.rel (!%p19_p13) target bundleno = 9 (0x9), region = 94 }
 0x26a   :  { %426 = vsyncpa [#allocation3], 1 }
 0x26b   :  { %428 = vsyncpa [#allocation3 + $0x1], 1 }
 0x26c   :  { %429 = vsyncpa [#allocation6], 1 }
 0x26d   :  { %430 = vsyncpa [#allocation4], 1 }
 0x26e   :  { %432 = vsyncpa [#allocation4 + $0x1], 1 }

</bundles_post_ra>
